<compile_context>
chip_gen: v5e
topology: v5e:2x2
jax: 0.10.0
libtpu: 0.0.40
codegen_flags: <defaults>
</compile_context>

<pallas_src>
import functools

import jax
import jax.numpy as jnp
from jax.experimental import pallas as pl
from jax.experimental.pallas import tpu as pltpu


def _autoencoder_kernel(x_ref, w_ref, b_ref, o_ref):
    # x_ref: [TBp, pack*dim]       packed activations (f32)
    # w_ref: [pack*dim, pack*dim]  block-diagonal fused weight (bf16 or f32)
    # b_ref: [1, pack*dim]         tiled fused bias (f32)
    # o_ref: [TBp, pack*dim]       packed output (f32)
    x = x_ref[...].astype(w_ref.dtype)                         # bf16 MXU operand
    y = jnp.dot(x, w_ref[...], preferred_element_type=jnp.float32) + b_ref[...]
    o_ref[...] = y.astype(o_ref.dtype)


def prepare_params(params, dim, *, weight_dtype=jnp.bfloat16):
    """One-time fusion + packing of PyTorch-layout Linear params.

    params = (w1 [hidden, dim], b1 [hidden], w2 [dim, hidden], b2 [dim]).
    Composes the two affine maps (no nonlinearity between them) in f32, then
    expands to the block-diagonal lane-dense layout.  Hoisted off the hot path.
    Pass weight_dtype=jnp.float32 for exact f32 semantics.
    """
    w1, b1, w2, b2 = params
    hidden = w1.shape[0]
    assert w1.shape == (hidden, dim) and w2.shape == (dim, hidden)
    # Pack `pack` logical rows of width `dim` into one 128-lane row when possible.
    # (If dim does not divide 128, pack falls back to 1 -> correct but slower,
    #  narrow-lane masked stores.)
    pack = 128 // dim if (dim < 128 and 128 % dim == 0) else 1

    f32 = jnp.float32
    w_fused = jnp.dot(w1.T.astype(f32), w2.T.astype(f32))               # [dim, dim]
    b_fused = jnp.dot(b1.astype(f32), w2.T.astype(f32)) + b2.astype(f32)  # [dim]

    if pack > 1:
        w_fused = jnp.kron(jnp.eye(pack, dtype=f32), w_fused)   # [pack*dim, pack*dim]

    return dict(
        w=w_fused.astype(weight_dtype),                          # [pack*dim, pack*dim]
        b=jnp.tile(b_fused.reshape(1, dim), (1, pack)),          # [1, pack*dim] f32
        dim=int(dim), hidden=int(hidden), pack=int(pack),
    )


def _choose_tile_rows(Bp):
    """Packed-row tile size: big blocks, >=2 grid steps when Bp > 16 (v7x
    megacore), ~4-8 steps for large batches (pipeline overlap)."""
    if Bp <= 16:
        return Bp                              # single tiny block; splitting only adds overhead
    rup8 = lambda n: -(-n // 8) * 8
    tbp = min(2048, max(512, rup8(pl.cdiv(Bp, 8))))   # aim for ~8 steps, clamp [512, 2048]
    tbp = min(tbp, rup8(pl.cdiv(Bp, 2)))              # guarantee at least 2 steps
    return tbp


@functools.partial(jax.jit, static_argnames=("dim", "pack"))
def _autoencoder_forward_impl(x, w, b, *, dim, pack):
    x2d = x.reshape(-1, dim)                   # x.view(-1, dim)
    B = x2d.shape[0]
    Bp = -(-B // pack)                         # packed (128-lane) row count
    B_pad = Bp * pack
    if B_pad != B:                             # static shape check; skipped when divisible
        x2d = jnp.pad(x2d, ((0, B_pad - B), (0, 0)))
    pd = pack * dim
    x_packed = x2d.reshape(Bp, pd)             # lane-dense layout (row-major, free)

    tbp = _choose_tile_rows(Bp)
    grid = (pl.cdiv(Bp, tbp),)

    cost = pl.CostEstimate(
        flops=2 * B_pad * pd * pd,             # actual MXU work: fused block-diagonal GEMM
        transcendentals=0,
        bytes_accessed=(x_packed.size * x_packed.dtype.itemsize
                        + w.size * w.dtype.itemsize
                        + b.size * b.dtype.itemsize
                        + Bp * pd * 4),        # f32 output write
    )

    out_packed = pl.pallas_call(
        _autoencoder_kernel,
        out_shape=jax.ShapeDtypeStruct((Bp, pd), jnp.float32),
        grid=grid,
        in_specs=[
            pl.BlockSpec((tbp, pd), lambda i: (i, 0)),   # x: walk the batch
            pl.BlockSpec((pd, pd), lambda i: (0, 0)),    # fused W: resident in VMEM
            pl.BlockSpec((1, pd), lambda i: (0, 0)),     # fused bias: resident
        ],
        out_specs=pl.BlockSpec((tbp, pd), lambda i: (i, 0)),
        compiler_params=pltpu.CompilerParams(
            dimension_semantics=("parallel",),           # megacore split on v7x
            vmem_limit_bytes=12 * 1024 * 1024,           # ~2x real footprint; v7x headroom
        ),
        cost_estimate=cost,
    )(x_packed, w, b)

    out = out_packed.reshape(B_pad, dim)
    if B_pad != B:
        out = out[:B]
    return out                                           # out.view(-1, dim)


def autoencoder_forward(x, prepared):
    """Equivalent of Autoencoder.forward; x may have arbitrary leading dims."""
    return _autoencoder_forward_impl(
        x, prepared["w"], prepared["b"], dim=prepared["dim"], pack=prepared["pack"])


def init_params(key, dim, theta):
    """Deterministic init matching nn.Linear shapes (uniform +/- 1/sqrt(fan_in))."""
    hidden = dim + theta
    k1, k2, k3, k4 = jax.random.split(key, 4)
    bound1 = 1.0 / jnp.sqrt(dim)
    bound2 = 1.0 / jnp.sqrt(hidden)
    w1 = jax.random.uniform(k1, (hidden, dim), jnp.float32, -bound1, bound1)
    b1 = jax.random.uniform(k2, (hidden,), jnp.float32, -bound1, bound1)
    w2 = jax.random.uniform(k3, (dim, hidden), jnp.float32, -bound2, bound2)
    b2 = jax.random.uniform(k4, (dim,), jnp.float32, -bound2, bound2)
    return (w1, b1, w2, b2)


if __name__ == "__main__":
    dim, theta = 32, 32             # encoder: 32 -> 64, decoder: 64 -> 32
    key = jax.random.PRNGKey(0)
    kx, kp, kb = jax.random.split(key, 3)

    params = init_params(kp, dim, theta)
    prepared = prepare_params(params, dim)   # fused + block-diagonal, done once

    def reference(xa):
        # Mirrors kernel numerics: fused f32 weights/bias, bf16-quantized x and
        # fused W, f32 accumulation (the intermediate z no longer exists).
        w1, b1, w2, b2 = params
        wf = jnp.dot(w1.T, w2.T)                      # [dim, dim], f32
        bf = jnp.dot(b1, w2.T) + b2                   # [dim], f32
        q = lambda a: a.astype(jnp.bfloat16).astype(jnp.float32)
        hi = jax.lax.Precision.HIGHEST
        return jnp.dot(q(xa), q(wf), precision=hi) + bf

    # Small case with extra leading dims; forward flattens to (-1, dim) = (32, 32).
    x = jax.random.normal(kx, (4, 8, dim), jnp.float32)
    out = jax.block_until_ready(autoencoder_forward(x, prepared))
    ref = reference(x.reshape(-1, dim))
    assert out.shape == (32, dim)
    assert jnp.allclose(out, ref, atol=2e-3, rtol=2e-3), \
        float(jnp.max(jnp.abs(out - ref)))

    # Larger batch to exercise the multi-step, double-buffered, megacore grid path.
    xb = jax.random.normal(kb, (8192, dim), jnp.float32)
    outb = jax.block_until_ready(autoencoder_forward(xb, prepared))
    refb = reference(xb)
    assert outb.shape == (8192, dim)
    assert jnp.allclose(outb, refb, atol=2e-3, rtol=2e-3), \
        float(jnp.max(jnp.abs(outb - refb)))

    print("KERNEL_OK")
</pallas_src>

<mosaic_0001>
module attributes {stable_mosaic.version = 11 : i64} {
  func.func @_autoencoder_kernel(%arg0: i32, %arg1: memref<8x128xf32, #tpu.memory_space<vmem>>, %arg2: memref<128x128xbf16, #tpu.memory_space<vmem>>, %arg3: memref<1x128xf32, #tpu.memory_space<vmem>>, %arg4: memref<8x128xf32, #tpu.memory_space<vmem>>) attributes {dimension_semantics = [#tpu.dimension_semantics<parallel>], iteration_bounds = array<i64: 1>, scalar_prefetch = 0 : i64, scratch_operands = 0 : i64, tpu.core_type = #tpu.core_type<tc>, window_params = [{transform_indices = @transform_0, window_bounds = array<i64: 8, 128>}, {pipeline_mode = #tpu.pipeline_mode<synchronous>, transform_indices = @transform_1, window_bounds = array<i64: 128, 128>}, {pipeline_mode = #tpu.pipeline_mode<synchronous>, transform_indices = @transform_2, window_bounds = array<i64: 1, 128>}, {transform_indices = @transform_3, window_bounds = array<i64: 8, 128>}]} {
    %c0 = arith.constant 0 : index
    %c0_0 = arith.constant 0 : index
    %0 = vector.load %arg1[%c0, %c0_0] : memref<8x128xf32, #tpu.memory_space<vmem>>, vector<8x128xf32>
    %1 = arith.truncf %0 : vector<8x128xf32> to vector<8x128xbf16>
    %c0_1 = arith.constant 0 : index
    %c0_2 = arith.constant 0 : index
    %2 = vector.load %arg2[%c0_1, %c0_2] : memref<128x128xbf16, #tpu.memory_space<vmem>>, vector<128x128xbf16>
    %cst = arith.constant dense<0.000000e+00> : vector<8x128xf32>
    %3 = tpu.matmul %1, %2, %cst {dimension_numbers = #tpu.dot_dimension_numbers<[1], [0], [0], [1], [0, 0, 1, 1], [], []>} : vector<8x128xbf16>, vector<128x128xbf16>, vector<8x128xf32> -> vector<8x128xf32>
    %c0_3 = arith.constant 0 : index
    %c0_4 = arith.constant 0 : index
    %4 = vector.load %arg3[%c0_3, %c0_4] : memref<1x128xf32, #tpu.memory_space<vmem>>, vector<1x128xf32>
    %5 = vector.broadcast %4 : vector<1x128xf32> to vector<8x128xf32>
    %6 = arith.addf %3, %5 : vector<8x128xf32>
    %c0_5 = arith.constant 0 : index
    %c0_6 = arith.constant 0 : index
    %7 = vector.load %arg4[%c0_5, %c0_6] : memref<8x128xf32, #tpu.memory_space<vmem>>, vector<8x128xf32>
    tpu.vector_store %arg4[%c0_5, %c0_6], %6 {strides = array<i32>} : memref<8x128xf32, #tpu.memory_space<vmem>>, vector<8x128xf32>,
    return
  }
  func.func @transform_0(%arg0: i32) -> (i32, i32) {
    %c0_i32 = arith.constant 0 : i32
    %c0_i32_0 = arith.constant 0 : i32
    return %arg0, %c0_i32 : i32, i32
  }
  func.func @transform_1(%arg0: i32) -> (i32, i32) {
    %c0_i32 = arith.constant 0 : i32
    %c0_i32_0 = arith.constant 0 : i32
    %c0_i32_1 = arith.constant 0 : i32
    return %c0_i32, %c0_i32_0 : i32, i32
  }
  func.func @transform_2(%arg0: i32) -> (i32, i32) {
    %c0_i32 = arith.constant 0 : i32
    %c0_i32_0 = arith.constant 0 : i32
    %c0_i32_1 = arith.constant 0 : i32
    return %c0_i32, %c0_i32_0 : i32, i32
  }
  func.func @transform_3(%arg0: i32) -> (i32, i32) {
    %c0_i32 = arith.constant 0 : i32
    %c0_i32_0 = arith.constant 0 : i32
    return %arg0, %c0_i32 : i32, i32
  }
}

</mosaic_0001>

<bundles_post_ra>
// kernel: _autoencoder_forward_impl.1
= control target key start
LH: loop header
LB: loop body
LE: loop exit
PB: predicated region body
PF: predicated region fallthrough
CT: control target
= control target key end

     0   :  { %8 = vsyncpa [#allocation3], 0  ;;  %s189_s15 = smov [#allocation2]   ;;  %s190_s17 = smov 64   ;;  %s224_s0 = inlined_call_operand.vmem [shape: f32[8,128], index: 0, kind: input, shape index: {}]   ;;  %s225_s1 = inlined_call_operand.hbm [shape: bf16[128,128], index: 1, kind: input, shape index: {}]   ;;  %s226_s2 = inlined_call_operand.vmem [shape: f32[1,128], index: 2, kind: input, shape index: {}]   ;;  %s227_s3 = inlined_call_operand.vmem [shape: f32[8,128], index: 3, kind: output, shape index: {}]  }
   0x1   :  { %s15_s14 = sshll.u32 %s225_s1, 4  ;;  %s17_s16 = sshll.u32 %s189_s15, 4  ;;  %s16_s14 = int_to_ptr.hbm [resolvable:$true] %s15_s14  ;;  %s18_s16 = int_to_ptr.vmem [resolvable:$true] %s17_s16 }
   0x2   :  { %s191_s18 = smov 4  }
   0x3   :  { %23 = dma.hbm_to_vmem [thread:$0]  %s16_s14, 1024, %s18_s16, [#allocation3], %s190_s17, %s190_s17, %s191_s18  }
   0x4   :  { %187 = dma.done.wait [#allocation3], 1024  }
   0x5   :  { %188 = vsyncadd [#allocation3], 4294966272  ;;  %v158_v0 = vld [vmem:[#allocation2 + $0x38] sm:$0xff]  ;;  %v157_v1 = vld [vmem:[#allocation2 + $0x30] sm:$0xff] }
   0x6   :  { %100 = vmatpush.bf16.msra.mxu0 %v158_v0  ;;  %v156_v2 = vld [vmem:[#allocation2 + $0x28] sm:$0xff]  ;;  %v155_v3 = vld [vmem:[#allocation2 + $0x20] sm:$0xff]  ;;  %v154_v4 = vld [vmem:[#allocation2 + $0x18] sm:$0xff] }
   0x7   :  { %v153_v5 = vld [vmem:[#allocation2 + $0x10] sm:$0xff]  ;;  %v152_v6 = vld [vmem:[#allocation2 + $0x8] sm:$0xff]  ;;  %v151_v7 = vld [vmem:[#allocation2] sm:$0xff] }
   0x8   :  { %v30_v8 = vld [vmem:[%s224_s0] sm:$0xff] }
   0x9   :  { %v31_v9 = vpack.c.bf16 %v30_v8, %v30_v8  ;;  %v162_v10 = vld [vmem:[%s226_s2] ss:$0 sm:$0xff] }
   0xa   :  { %101 = vmatpush.bf16.msra.mxu0 %v157_v1 }
   0xe   :  { %102 = vmatpush.bf16.msra.mxu0 %v156_v2 }
  0x12   :  { %103 = vmatpush.bf16.msra.mxu0 %v155_v3 }
  0x16   :  { %104 = vmatpush.bf16.msra.mxu0 %v154_v4 }
  0x1a   :  { %105 = vmatpush.bf16.msra.mxu0 %v153_v5 }
  0x1e   :  { %106 = vmatpush.bf16.msra.mxu0 %v152_v6 }
  0x22   :  { %107 = vmatpush.bf16.msra.mxu0 %v151_v7 }
  0x25   :  { %108 = vmatmul.bf16.vlgmr.msra.gmra.mxu0 %v31_v9 }
  0xa2   :  { %v109_v11 = vpop.f32.mrf.mxu0 }
  0xa3   :  { %v110_v12 = vadd.f32 %v162_v10, %v109_v11 }
  0xa5   :  { %113 = vst [vmem:[%s227_s3] sm:$0xff] %v110_v12 }
  0xaa   :  { %v111_v13 = vpop.f32.mrf.mxu0 }
  0xab   :  { %118 = vsyncpa [#allocation3], 1 }

</bundles_post_ra>
